<compile_context>
chip_gen: v7x
topology: tpu7x:2x2x1
jax: 0.10.0
libtpu: 0.0.40
codegen_flags: <defaults>
</compile_context>

<pallas_src>
import functools

import jax
import jax.numpy as jnp
from jax.experimental import pallas as pl
from jax.experimental.pallas import tpu as pltpu

EPS = 1e-5


def resblock_kernel(xf_ref, mask_ref,
                    w1_ref, b1_ref, g1_ref, bt1_ref,
                    w2_ref, b2_ref, g2_ref, bt2_ref,
                    pool_ref, poolt_ref,
                    out_ref, *, N, Hpa, H, W, C, K, L):
    p = K // 2
    R = N * Hpa
    V = R - 2 * p                        # computed rows (frame rows p .. R-1-p)
    inv_cnt = 1.0 / float(N * H * W)

    mask = mask_ref[...]                 # (V, 1): 1.0 on data rows, 0.0 on halo rows

    def conv(frame_bf16, w_ref, b_ref):
        # K height taps folded into one matmul: K row-shifted views of the
        # frame concatenated along lanes vs. the (K*L, L) stacked weight.
        patches = jnp.concatenate([frame_bf16[d:d + V, :] for d in range(K)],
                                  axis=1)                                # (V, K*L) bf16
        z = jnp.dot(patches, w_ref[...],
                    preferred_element_type=jnp.float32)                  # (V, L) f32
        return (z + b_ref[...]) * mask   # zero halo rows -> clean BN statistics

    def batchnorm(z, g_ref, bt_ref):
        # Fused training-mode BN: single reduction pass, two tiny pooling
        # matmuls (collapse / re-broadcast the W channel replicas), one FMA.
        st = jnp.concatenate([jnp.sum(z, axis=0, keepdims=True),
                              jnp.sum(z * z, axis=0, keepdims=True)],
                             axis=0)                                     # (2, L)
        pc = jnp.dot(st, pool_ref[...],
                     preferred_element_type=jnp.float32) * inv_cnt       # (2, C)
        mean_c = pc[0:1, :]
        var_c = pc[1:2, :] - mean_c * mean_c                             # biased var
        a_c = g_ref[...] * jax.lax.rsqrt(var_c + EPS)
        b_c = bt_ref[...] - mean_c * a_c
        ab = jnp.dot(jnp.concatenate([a_c, b_c], axis=0), poolt_ref[...],
                     preferred_element_type=jnp.float32)                 # (2, L)
        return z * ab[0:1, :] + ab[1:2, :]

    xf = xf_ref[...]                                                     # (R, L) f32

    # ---- conv1 -> bn1 -> relu ----
    z1 = conv(xf.astype(jnp.bfloat16), w1_ref, b1_ref)
    y1 = jnp.maximum(batchnorm(z1, g1_ref, bt1_ref), 0.0) * mask

    # ---- re-frame (zero height halos, no scratch round-trip) and conv2 -> bn2 ----
    zb = jnp.zeros((p, L), jnp.bfloat16)
    frame2 = jnp.concatenate([zb, y1.astype(jnp.bfloat16), zb], axis=0)  # (R, L) bf16
    z2 = conv(frame2, w2_ref, b2_ref)
    y2 = batchnorm(z2, g2_ref, bt2_ref)

    # ---- residual add + relu, written back as one aligned full-frame store ----
    res = jnp.maximum(xf[p:p + V, :] + y2, 0.0)
    zf = jnp.zeros((p, L), jnp.float32)
    out_ref[...] = jnp.concatenate([zf, res, zf], axis=0)


def residual_block(x, w1, b1, g1, bt1, w2, b2, g2, bt2, kernel_size=3):
    """x: (N, C, H, W) float32, conv weights in PyTorch OIHW layout."""
    N, C, H, W = x.shape
    K = kernel_size
    p = K // 2
    WC = W * C
    L = ((WC + 127) // 128) * 128              # lane-padded width (multiple of 128)
    Hpa = ((H + 2 * p + 7) // 8) * 8           # sublane-aligned per-sample row stride
    R = N * Hpa
    V = R - 2 * p

    # ---- layout glue: NCHW -> lane-dense padded-frame slab (R, L), f32 ----
    x_nhwc = jnp.transpose(x, (0, 2, 3, 1)).astype(jnp.float32).reshape(N, H, WC)
    xf = jnp.pad(x_nhwc, ((0, 0), (p, Hpa - H - p), (0, L - WC))).reshape(R, L)

    # ---- fold width taps into block-tridiagonal lane matrices, stack the
    #      height taps along the contraction axis, cast to bf16 ----
    def fold(w):
        wf = w.astype(jnp.float32)
        mats = []
        for dh in range(K):
            m = jnp.zeros((WC, WC), jnp.float32)
            for dw in range(K):
                m = m + jnp.kron(jnp.eye(W, k=p - dw, dtype=jnp.float32),
                                 wf[:, :, dh, dw].T)
            mats.append(jnp.pad(m, ((0, L - WC), (0, L - WC))))
        return jnp.concatenate(mats, axis=0).astype(jnp.bfloat16)        # (K*L, L)

    wcat1, wcat2 = fold(w1), fold(w2)

    tile_bias = lambda v: jnp.pad(jnp.tile(v.astype(jnp.float32), W),
                                  (0, L - WC)).reshape(1, L)
    b1t, b2t = tile_bias(b1), tile_bias(b2)
    g1r, bt1r = g1.astype(jnp.float32).reshape(1, C), bt1.astype(jnp.float32).reshape(1, C)
    g2r, bt2r = g2.astype(jnp.float32).reshape(1, C), bt2.astype(jnp.float32).reshape(1, C)

    # pooling matrices: collapse / re-broadcast the W channel replicas on the lane axis
    pool = jnp.pad(jnp.kron(jnp.ones((W, 1), jnp.float32),
                            jnp.eye(C, dtype=jnp.float32)),
                   ((0, L - WC), (0, 0)))                                # (L, C)
    poolt = pool.T                                                       # (C, L)

    # row mask: 1.0 on data rows of each sample's frame, 0.0 on halo/pad rows
    mask = (jnp.tile(jnp.arange(Hpa) < H, N)[:V]).astype(jnp.float32).reshape(V, 1)

    kern = functools.partial(resblock_kernel,
                             N=N, Hpa=Hpa, H=H, W=W, C=C, K=K, L=L)
    vmem = pl.BlockSpec(memory_space=pltpu.MemorySpace.VMEM)

    out_f = pl.pallas_call(
        kern,
        out_shape=jax.ShapeDtypeStruct((R, L), jnp.float32),
        in_specs=[vmem] * 12,
        out_specs=vmem,
    )(xf, mask, wcat1, b1t, g1r, bt1r, wcat2, b2t, g2r, bt2r, pool, poolt)

    out = out_f.reshape(N, Hpa, L)[:, p:p + H, :WC].reshape(N, H, W, C)
    return jnp.transpose(out, (0, 3, 1, 2))


def ref_residual_block(x, w1, b1, g1, bt1, w2, b2, g2, bt2, kernel_size=3):
    """Pure-JAX reference matching the PyTorch forward (training-mode BN)."""
    p = kernel_size // 2

    def conv(z, w, b):
        y = jax.lax.conv_general_dilated(
            z, w, window_strides=(1, 1), padding=((p, p), (p, p)),
            dimension_numbers=('NCHW', 'OIHW', 'NCHW'))
        return y + b[None, :, None, None]

    def bn(z, g, be):
        mu = jnp.mean(z, axis=(0, 2, 3), keepdims=True)
        var = jnp.mean(jnp.square(z - mu), axis=(0, 2, 3), keepdims=True)
        return (z - mu) * jax.lax.rsqrt(var + EPS) * g[None, :, None, None] \
            + be[None, :, None, None]

    y = jax.nn.relu(bn(conv(x, w1, b1), g1, bt1))
    y = bn(conv(y, w2, b2), g2, bt2)
    return jax.nn.relu(x + y)


if __name__ == "__main__":
    # Connect4 board is 6x7; small filter count for the demo.
    N, C, H, W, K = 2, 16, 6, 7, 3
    key = jax.random.PRNGKey(0)
    ks = jax.random.split(key, 9)

    x = jax.random.normal(ks[0], (N, C, H, W), jnp.float32)

    s = 1.0 / (C * K * K) ** 0.5
    w1 = jax.random.uniform(ks[1], (C, C, K, K), jnp.float32, -s, s)
    b1 = jax.random.uniform(ks[2], (C,), jnp.float32, -s, s)
    w2 = jax.random.uniform(ks[3], (C, C, K, K), jnp.float32, -s, s)
    b2 = jax.random.uniform(ks[4], (C,), jnp.float32, -s, s)
    g1 = 1.0 + 0.1 * jax.random.normal(ks[5], (C,), jnp.float32)
    bt1 = 0.1 * jax.random.normal(ks[6], (C,), jnp.float32)
    g2 = 1.0 + 0.1 * jax.random.normal(ks[7], (C,), jnp.float32)
    bt2 = 0.1 * jax.random.normal(ks[8], (C,), jnp.float32)

    out = residual_block(x, w1, b1, g1, bt1, w2, b2, g2, bt2, kernel_size=K)
    out = jax.block_until_ready(out)

    ref = ref_residual_block(x, w1, b1, g1, bt1, w2, b2, g2, bt2, kernel_size=K)
    assert out.shape == (N, C, H, W)
    assert bool(jnp.allclose(out, ref, atol=5e-2, rtol=5e-2)), \
        "Pallas ResidualBlock does not match JAX reference"

    print("KERNEL_OK")
</pallas_src>

<mosaic_0001>
module attributes {stable_mosaic.version = 11 : i64} {
  func.func @resblock_kernel(%arg0: memref<16x128xf32, #tpu.memory_space<vmem>>, %arg1: memref<14x1xf32, #tpu.memory_space<vmem>>, %arg2: memref<384x128xbf16, #tpu.memory_space<vmem>>, %arg3: memref<1x128xf32, #tpu.memory_space<vmem>>, %arg4: memref<1x16xf32, #tpu.memory_space<vmem>>, %arg5: memref<1x16xf32, #tpu.memory_space<vmem>>, %arg6: memref<384x128xbf16, #tpu.memory_space<vmem>>, %arg7: memref<1x128xf32, #tpu.memory_space<vmem>>, %arg8: memref<1x16xf32, #tpu.memory_space<vmem>>, %arg9: memref<1x16xf32, #tpu.memory_space<vmem>>, %arg10: memref<128x16xf32, #tpu.memory_space<vmem>>, %arg11: memref<16x128xf32, #tpu.memory_space<vmem>>, %arg12: memref<16x128xf32, #tpu.memory_space<vmem>>) attributes {dimension_semantics = [], scalar_prefetch = 0 : i64, scratch_operands = 0 : i64, tpu.core_type = #tpu.core_type<tc>} {
    %c0 = arith.constant 0 : index
    %c0_0 = arith.constant 0 : index
    %0 = vector.load %arg1[%c0, %c0_0] : memref<14x1xf32, #tpu.memory_space<vmem>>, vector<14x1xf32>
    %c0_1 = arith.constant 0 : index
    %c0_2 = arith.constant 0 : index
    %1 = vector.load %arg0[%c0_1, %c0_2] : memref<16x128xf32, #tpu.memory_space<vmem>>, vector<16x128xf32>
    %2 = arith.truncf %1 : vector<16x128xf32> to vector<16x128xbf16>
    %3 = vector.extract_strided_slice %2 {offsets = [0, 0], sizes = [14, 128], strides = [1, 1]} : vector<16x128xbf16> to vector<14x128xbf16>
    %4 = vector.extract_strided_slice %2 {offsets = [1, 0], sizes = [14, 128], strides = [1, 1]} : vector<16x128xbf16> to vector<14x128xbf16>
    %5 = vector.extract_strided_slice %2 {offsets = [2, 0], sizes = [14, 128], strides = [1, 1]} : vector<16x128xbf16> to vector<14x128xbf16>
    %6 = tpu.concatenate %3, %4, %5 in 1 : vector<14x128xbf16>, vector<14x128xbf16>, vector<14x128xbf16> -> vector<14x384xbf16>
    %c0_3 = arith.constant 0 : index
    %c0_4 = arith.constant 0 : index
    %7 = vector.load %arg2[%c0_3, %c0_4] : memref<384x128xbf16, #tpu.memory_space<vmem>>, vector<384x128xbf16>
    %cst = arith.constant dense<0.000000e+00> : vector<14x128xf32>
    %8 = tpu.matmul %6, %7, %cst {dimension_numbers = #tpu.dot_dimension_numbers<[1], [0], [0], [1], [0, 0, 1, 1], [], []>} : vector<14x384xbf16>, vector<384x128xbf16>, vector<14x128xf32> -> vector<14x128xf32>
    %c0_5 = arith.constant 0 : index
    %c0_6 = arith.constant 0 : index
    %9 = vector.load %arg3[%c0_5, %c0_6] : memref<1x128xf32, #tpu.memory_space<vmem>>, vector<1x128xf32>
    %10 = vector.broadcast %9 : vector<1x128xf32> to vector<14x128xf32>
    %11 = arith.addf %8, %10 : vector<14x128xf32>
    %12 = vector.broadcast %0 : vector<14x1xf32> to vector<14x128xf32>
    %13 = arith.mulf %11, %12 : vector<14x128xf32>
    %cst_7 = arith.constant dense<0.000000e+00> : vector<128xf32>
    %14 = vector.multi_reduction <add>, %13, %cst_7 [0] : vector<14x128xf32> to vector<128xf32>
    %15 = vector.shape_cast %14 : vector<128xf32> to vector<1x128xf32>
    %16 = arith.mulf %13, %13 : vector<14x128xf32>
    %cst_8 = arith.constant dense<0.000000e+00> : vector<128xf32>
    %17 = vector.multi_reduction <add>, %16, %cst_8 [0] : vector<14x128xf32> to vector<128xf32>
    %18 = vector.shape_cast %17 : vector<128xf32> to vector<1x128xf32>
    %19 = tpu.concatenate %15, %18 in 0 : vector<1x128xf32>, vector<1x128xf32> -> vector<2x128xf32>
    %c0_9 = arith.constant 0 : index
    %c0_10 = arith.constant 0 : index
    %20 = vector.load %arg10[%c0_9, %c0_10] : memref<128x16xf32, #tpu.memory_space<vmem>>, vector<128x16xf32>
    %cst_11 = arith.constant dense<0.000000e+00> : vector<2x16xf32>
    %21 = tpu.matmul %19, %20, %cst_11 {dimension_numbers = #tpu.dot_dimension_numbers<[1], [0], [0], [1], [0, 0, 1, 1], [], []>} : vector<2x128xf32>, vector<128x16xf32>, vector<2x16xf32> -> vector<2x16xf32>
    %cst_12 = arith.constant 0.0119047621 : f32
    %22 = vector.broadcast %cst_12 : f32 to vector<2x16xf32>
    %23 = arith.mulf %21, %22 : vector<2x16xf32>
    %24 = vector.extract_strided_slice %23 {offsets = [0, 0], sizes = [1, 16], strides = [1, 1]} : vector<2x16xf32> to vector<1x16xf32>
    %25 = vector.extract_strided_slice %23 {offsets = [1, 0], sizes = [1, 16], strides = [1, 1]} : vector<2x16xf32> to vector<1x16xf32>
    %26 = arith.mulf %24, %24 : vector<1x16xf32>
    %27 = arith.subf %25, %26 : vector<1x16xf32>
    %c0_13 = arith.constant 0 : index
    %c0_14 = arith.constant 0 : index
    %28 = vector.load %arg4[%c0_13, %c0_14] : memref<1x16xf32, #tpu.memory_space<vmem>>, vector<1x16xf32>
    %cst_15 = arith.constant 9.99999974E-6 : f32
    %29 = vector.broadcast %cst_15 : f32 to vector<1x16xf32>
    %30 = arith.addf %27, %29 : vector<1x16xf32>
    %31 = math.rsqrt %30 : vector<1x16xf32>
    %32 = arith.mulf %28, %31 : vector<1x16xf32>
    %c0_16 = arith.constant 0 : index
    %c0_17 = arith.constant 0 : index
    %33 = vector.load %arg5[%c0_16, %c0_17] : memref<1x16xf32, #tpu.memory_space<vmem>>, vector<1x16xf32>
    %34 = arith.mulf %24, %32 : vector<1x16xf32>
    %35 = arith.subf %33, %34 : vector<1x16xf32>
    %36 = tpu.concatenate %32, %35 in 0 : vector<1x16xf32>, vector<1x16xf32> -> vector<2x16xf32>
    %c0_18 = arith.constant 0 : index
    %c0_19 = arith.constant 0 : index
    %37 = vector.load %arg11[%c0_18, %c0_19] : memref<16x128xf32, #tpu.memory_space<vmem>>, vector<16x128xf32>
    %cst_20 = arith.constant dense<0.000000e+00> : vector<2x128xf32>
    %38 = tpu.matmul %36, %37, %cst_20 {dimension_numbers = #tpu.dot_dimension_numbers<[1], [0], [0], [1], [0, 0, 1, 1], [], []>} : vector<2x16xf32>, vector<16x128xf32>, vector<2x128xf32> -> vector<2x128xf32>
    %39 = vector.extract_strided_slice %38 {offsets = [0, 0], sizes = [1, 128], strides = [1, 1]} : vector<2x128xf32> to vector<1x128xf32>
    %40 = vector.broadcast %39 : vector<1x128xf32> to vector<14x128xf32>
    %41 = arith.mulf %13, %40 : vector<14x128xf32>
    %42 = vector.extract_strided_slice %38 {offsets = [1, 0], sizes = [1, 128], strides = [1, 1]} : vector<2x128xf32> to vector<1x128xf32>
    %43 = vector.broadcast %42 : vector<1x128xf32> to vector<14x128xf32>
    %44 = arith.addf %41, %43 : vector<14x128xf32>
    %cst_21 = arith.constant 0.000000e+00 : f32
    %45 = vector.broadcast %cst_21 : f32 to vector<14x128xf32>
    %46 = arith.maximumf %44, %45 : vector<14x128xf32>
    %47 = vector.broadcast %0 : vector<14x1xf32> to vector<14x128xf32>
    %48 = arith.mulf %46, %47 : vector<14x128xf32>
    %cst_22 = arith.constant 0.000000e+00 : bf16
    %49 = vector.broadcast %cst_22 : bf16 to vector<1x128xbf16>
    %50 = arith.truncf %48 : vector<14x128xf32> to vector<14x128xbf16>
    %51 = tpu.concatenate %49, %50, %49 in 0 : vector<1x128xbf16>, vector<14x128xbf16>, vector<1x128xbf16> -> vector<16x128xbf16>
    %52 = vector.extract_strided_slice %51 {offsets = [0, 0], sizes = [14, 128], strides = [1, 1]} : vector<16x128xbf16> to vector<14x128xbf16>
    %53 = vector.extract_strided_slice %51 {offsets = [1, 0], sizes = [14, 128], strides = [1, 1]} : vector<16x128xbf16> to vector<14x128xbf16>
    %54 = vector.extract_strided_slice %51 {offsets = [2, 0], sizes = [14, 128], strides = [1, 1]} : vector<16x128xbf16> to vector<14x128xbf16>
    %55 = tpu.concatenate %52, %53, %54 in 1 : vector<14x128xbf16>, vector<14x128xbf16>, vector<14x128xbf16> -> vector<14x384xbf16>
    %c0_23 = arith.constant 0 : index
    %c0_24 = arith.constant 0 : index
    %56 = vector.load %arg6[%c0_23, %c0_24] : memref<384x128xbf16, #tpu.memory_space<vmem>>, vector<384x128xbf16>
    %cst_25 = arith.constant dense<0.000000e+00> : vector<14x128xf32>
    %57 = tpu.matmul %55, %56, %cst_25 {dimension_numbers = #tpu.dot_dimension_numbers<[1], [0], [0], [1], [0, 0, 1, 1], [], []>} : vector<14x384xbf16>, vector<384x128xbf16>, vector<14x128xf32> -> vector<14x128xf32>
    %c0_26 = arith.constant 0 : index
    %c0_27 = arith.constant 0 : index
    %58 = vector.load %arg7[%c0_26, %c0_27] : memref<1x128xf32, #tpu.memory_space<vmem>>, vector<1x128xf32>
    %59 = vector.broadcast %58 : vector<1x128xf32> to vector<14x128xf32>
    %60 = arith.addf %57, %59 : vector<14x128xf32>
    %61 = vector.broadcast %0 : vector<14x1xf32> to vector<14x128xf32>
    %62 = arith.mulf %60, %61 : vector<14x128xf32>
    %cst_28 = arith.constant dense<0.000000e+00> : vector<128xf32>
    %63 = vector.multi_reduction <add>, %62, %cst_28 [0] : vector<14x128xf32> to vector<128xf32>
    %64 = vector.shape_cast %63 : vector<128xf32> to vector<1x128xf32>
    %65 = arith.mulf %62, %62 : vector<14x128xf32>
    %cst_29 = arith.constant dense<0.000000e+00> : vector<128xf32>
    %66 = vector.multi_reduction <add>, %65, %cst_29 [0] : vector<14x128xf32> to vector<128xf32>
    %67 = vector.shape_cast %66 : vector<128xf32> to vector<1x128xf32>
    %68 = tpu.concatenate %64, %67 in 0 : vector<1x128xf32>, vector<1x128xf32> -> vector<2x128xf32>
    %c0_30 = arith.constant 0 : index
    %c0_31 = arith.constant 0 : index
    %69 = vector.load %arg10[%c0_30, %c0_31] : memref<128x16xf32, #tpu.memory_space<vmem>>, vector<128x16xf32>
    %cst_32 = arith.constant dense<0.000000e+00> : vector<2x16xf32>
    %70 = tpu.matmul %68, %69, %cst_32 {dimension_numbers = #tpu.dot_dimension_numbers<[1], [0], [0], [1], [0, 0, 1, 1], [], []>} : vector<2x128xf32>, vector<128x16xf32>, vector<2x16xf32> -> vector<2x16xf32>
    %cst_33 = arith.constant 0.0119047621 : f32
    %71 = vector.broadcast %cst_33 : f32 to vector<2x16xf32>
    %72 = arith.mulf %70, %71 : vector<2x16xf32>
    %73 = vector.extract_strided_slice %72 {offsets = [0, 0], sizes = [1, 16], strides = [1, 1]} : vector<2x16xf32> to vector<1x16xf32>
    %74 = vector.extract_strided_slice %72 {offsets = [1, 0], sizes = [1, 16], strides = [1, 1]} : vector<2x16xf32> to vector<1x16xf32>
    %75 = arith.mulf %73, %73 : vector<1x16xf32>
    %76 = arith.subf %74, %75 : vector<1x16xf32>
    %c0_34 = arith.constant 0 : index
    %c0_35 = arith.constant 0 : index
    %77 = vector.load %arg8[%c0_34, %c0_35] : memref<1x16xf32, #tpu.memory_space<vmem>>, vector<1x16xf32>
    %cst_36 = arith.constant 9.99999974E-6 : f32
    %78 = vector.broadcast %cst_36 : f32 to vector<1x16xf32>
    %79 = arith.addf %76, %78 : vector<1x16xf32>
    %80 = math.rsqrt %79 : vector<1x16xf32>
    %81 = arith.mulf %77, %80 : vector<1x16xf32>
    %c0_37 = arith.constant 0 : index
    %c0_38 = arith.constant 0 : index
    %82 = vector.load %arg9[%c0_37, %c0_38] : memref<1x16xf32, #tpu.memory_space<vmem>>, vector<1x16xf32>
    %83 = arith.mulf %73, %81 : vector<1x16xf32>
    %84 = arith.subf %82, %83 : vector<1x16xf32>
    %85 = tpu.concatenate %81, %84 in 0 : vector<1x16xf32>, vector<1x16xf32> -> vector<2x16xf32>
    %c0_39 = arith.constant 0 : index
    %c0_40 = arith.constant 0 : index
    %86 = vector.load %arg11[%c0_39, %c0_40] : memref<16x128xf32, #tpu.memory_space<vmem>>, vector<16x128xf32>
    %cst_41 = arith.constant dense<0.000000e+00> : vector<2x128xf32>
    %87 = tpu.matmul %85, %86, %cst_41 {dimension_numbers = #tpu.dot_dimension_numbers<[1], [0], [0], [1], [0, 0, 1, 1], [], []>} : vector<2x16xf32>, vector<16x128xf32>, vector<2x128xf32> -> vector<2x128xf32>
    %88 = vector.extract_strided_slice %87 {offsets = [0, 0], sizes = [1, 128], strides = [1, 1]} : vector<2x128xf32> to vector<1x128xf32>
    %89 = vector.broadcast %88 : vector<1x128xf32> to vector<14x128xf32>
    %90 = arith.mulf %62, %89 : vector<14x128xf32>
    %91 = vector.extract_strided_slice %87 {offsets = [1, 0], sizes = [1, 128], strides = [1, 1]} : vector<2x128xf32> to vector<1x128xf32>
    %92 = vector.broadcast %91 : vector<1x128xf32> to vector<14x128xf32>
    %93 = arith.addf %90, %92 : vector<14x128xf32>
    %94 = vector.extract_strided_slice %1 {offsets = [1, 0], sizes = [14, 128], strides = [1, 1]} : vector<16x128xf32> to vector<14x128xf32>
    %95 = arith.addf %94, %93 : vector<14x128xf32>
    %cst_42 = arith.constant 0.000000e+00 : f32
    %96 = vector.broadcast %cst_42 : f32 to vector<14x128xf32>
    %97 = arith.maximumf %95, %96 : vector<14x128xf32>
    %cst_43 = arith.constant 0.000000e+00 : f32
    %98 = vector.broadcast %cst_43 : f32 to vector<1x128xf32>
    %99 = tpu.concatenate %98, %97, %98 in 0 : vector<1x128xf32>, vector<14x128xf32>, vector<1x128xf32> -> vector<16x128xf32>
    %c0_44 = arith.constant 0 : index
    %c0_45 = arith.constant 0 : index
    %100 = vector.load %arg12[%c0_44, %c0_45] : memref<16x128xf32, #tpu.memory_space<vmem>>, vector<16x128xf32>
    tpu.vector_store %arg12[%c0_44, %c0_45], %99 {strides = array<i32>} : memref<16x128xf32, #tpu.memory_space<vmem>>, vector<16x128xf32>,
    return
  }
}

</mosaic_0001>

<bundles_post_ra>
// kernel: tpu_custom_call.1
= control target key start
LH: loop header
LB: loop body
LE: loop exit
PB: predicated region body
PF: predicated region fallthrough
CT: control target
= control target key end

     0   :  { %17 = vsyncpa [#allocation3], 0  ;;  %s1984_s0 = inlined_call_operand.vmem [shape: f32[16,128], index: 0, kind: input, shape index: {}]   ;;  %s1985_s1 = inlined_call_operand.vmem [shape: f32[14,1], index: 1, kind: input, shape index: {}]   ;;  %s1986_s2 = inlined_call_operand.hbm [shape: bf16[384,128], index: 2, kind: input, shape index: {}]   ;;  %s1987_s3 = inlined_call_operand.vmem [shape: f32[1,128], index: 3, kind: input, shape index: {}]   ;;  %s1988_s4 = inlined_call_operand.vmem [shape: f32[1,16], index: 4, kind: input, shape index: {}]   ;;  %s1989_s5 = inlined_call_operand.vmem [shape: f32[1,16], index: 5, kind: input, shape index: {}]   ;;  %s1990_s6 = inlined_call_operand.hbm [shape: bf16[384,128], index: 6, kind: input, shape index: {}]   ;;  %s1991_s7 = inlined_call_operand.vmem [shape: f32[1,128], index: 7, kind: input, shape index: {}]   ;;  %s1992_s8 = inlined_call_operand.vmem [shape: f32[1,16], index: 8, kind: input, shape index: {}]   ;;  %s1993_s9 = inlined_call_operand.vmem [shape: f32[1,16], index: 9, kind: input, shape index: {}]   ;;  %s1994_s10 = inlined_call_operand.vmem [shape: f32[128,16], index: 10, kind: input, shape index: {}]   ;;  %s1995_s11 = inlined_call_operand.vmem [shape: f32[16,128], index: 11, kind: input, shape index: {}]   ;;  %s1996_s12 = inlined_call_operand.hbm [shape: f32[16,128], index: 12, kind: output, shape index: {}]  }
   0x1   :  { %18 = vsyncpa [#allocation6], 0 }
   0x2   :  { %19 = vsyncpa [#allocation4], 0  ;;  %s1641_s21 = smov [#allocation2]   ;;  %s1569_s25 = scalar_lea.hbm %s1986_s2, 3072 }
   0x3   :  { %s29_s22 = sshll.u32 %s1641_s21, 4  ;;  %p1570_p0 = scmp.ne.s32.totalorder %s1986_s2, %s1569_s25  ;;  %s30_s22 = int_to_ptr.vmem [resolvable:$true] %s29_s22 }
   0x4   :  { %p1573_p1 = scmp.lt.u32.totalorder %s1569_s25, %s1986_s2 }
   0x6   :  { %p1575_p2 = pnand %p1573_p1, %p1570_p0 }
   0x8   :  { %1578 = shalt.err (!%p1575_p2)
}
   0x9   :  { %s1579_s30 = scalar_lea.vmem %s30_s22, 3072  ;;  %p1584_p4 = scmp.lt.s32.totalorder %s30_s22, %s30_s22 }
   0xa   :  { %p1580_p3 = scmp.ne.s32.totalorder %s30_s22, %s1579_s30  ;;  %p1585_p5 = scmp.lt.s32.totalorder %s1579_s30, %s1579_s30 }
   0xc   :  { %p1586_p6 = por %p1585_p5, %p1584_p4 }
   0xe   :  { %p1587_p7 = pnand %p1586_p6, %p1580_p3 }
  0x10   :  { %1590 = shalt.err (!%p1587_p7)
}
  0x11   :  { %s1642_s13 = smov 64   ;;  %s1643_s14 = smov 4  }
  0x12   :  { %35 = dma.hbm_to_vmem [thread:$0]  %s1986_s2, 3072, %s30_s22, [#allocation3], %s1642_s13, %s1642_s13, %s1643_s14  }
  0x13   :  { %s1644_s17 = smov [#allocation5]   ;;  %s1591_s21 = scalar_lea.hbm %s1990_s6, 3072 }
  0x14   :  { %s47_s18 = sshll.u32 %s1644_s17, 4  ;;  %p1592_p8 = scmp.ne.s32.totalorder %s1990_s6, %s1591_s21  ;;  %s48_s18 = int_to_ptr.vmem [resolvable:$true] %s47_s18 }
  0x15   :  { %p1595_p9 = scmp.lt.u32.totalorder %s1591_s21, %s1990_s6 }
  0x17   :  { %p1597_p10 = pnand %p1595_p9, %p1592_p8 }
  0x19   :  { %1600 = shalt.err (!%p1597_p10)
}
  0x1a   :  { %s1601_s27 = scalar_lea.vmem %s48_s18, 3072  ;;  %p1606_p12 = scmp.lt.s32.totalorder %s48_s18, %s48_s18 }
  0x1b   :  { %p1602_p11 = scmp.ne.s32.totalorder %s48_s18, %s1601_s27  ;;  %p1607_p13 = scmp.lt.s32.totalorder %s1601_s27, %s1601_s27 }
  0x1d   :  { %p1608_p0 = por %p1607_p13, %p1606_p12 }
  0x1f   :  { %p1609_p1 = pnand %p1608_p0, %p1602_p11 }
  0x21   :  { %1612 = shalt.err (!%p1609_p1)
}
  0x22   :  { %53 = dma.hbm_to_vmem [thread:$0]  %s1990_s6, 3072, %s48_s18, [#allocation6], %s1642_s13, %s1642_s13, %s1643_s14  }
  0x23   :  { %1635 = dma.done.wait [#allocation3], 3072  }
  0x24   :  { %1636 = vsyncadd [#allocation3], 4294964224 }
  0x25   :  { %1637 = dma.done.wait [#allocation6], 3072  }
  0x26   :  { %1638 = vsyncadd [#allocation6], 4294964224  ;;  %v1645_v0 = vmov 0.0   ;;  %vm1646_vm0 = vmmov 0   ;;  %v1647_v1 = vmov 0   ;;  %v1517_v2 = vld [vmem:[#allocation2 + $0x40] sm:$0xff]  }
  0x27   :  { %1326 = vmatprep.subr.bf16.mxu1 %v1645_v0  ;;  %1342 = vmatprep.mubr.msk.bf16.mxu1 %vm1646_vm0, %v1645_v0  ;;  %v1518_v3 = vld [vmem:[#allocation2] sm:$0xff]   ;;  %v1520_v5 = vld [vmem:[#allocation2 + $0x48] sm:$0xff]   ;;  %v1523_v8 = vld [vmem:[#allocation2 + $0x50] sm:$0xff]   ;;  %v1648_v39 = vmov 0.0|0.0   ;;  %vm380_vm1 = vcmask 1045504   ;;  %vm399_vm2 = vcmask 1040384  }
  0x28   :  { %1516 = vset.pattern.permute.xlu0 %v1647_v1  ;;  %1224 = vmatprep.subr.bf16.mxu0 %v1517_v2  ;;  %v1519_v4 = vld [vmem:[#allocation2 + $0x80] sm:$0xff]   ;;  %v1521_v6 = vld [vmem:[#allocation2 + $0x8] sm:$0xff]   ;;  %v1524_v9 = vld [vmem:[#allocation2 + $0x10] sm:$0xff]   ;;  %vm526_vm3 = vcmask 130048   ;;  %vm626_vm4 = vsmask.f32 256 }
  0x29   :  { %1225 = vmatpush3.bf16.msra.mxu0 %v1518_v3  ;;  %1327 = vmatpush3.bf16.msra.mxu1 %v1519_v4  ;;  %v1522_v7 = vld [vmem:[#allocation2 + $0x88] sm:$0xff]   ;;  %v1525_v10 = vld [vmem:[#allocation2 + $0x90] sm:$0xff]   ;;  %v1526_v11 = vld [vmem:[#allocation2 + $0x58] sm:$0xff]   ;;  %vm629_vm5 = vcmask 1047552   ;;  %vm630_vm6 = vsmask.f32 7424 }
  0x2a   :  { %1226 = vmatprep.subr.bf16.mxu0 %v1520_v5  ;;  %1328 = vmatprep.subr.bf16.mxu1 %v1645_v0  ;;  %v1527_v12 = vld [vmem:[#allocation2 + $0x18] sm:$0xff]   ;;  %v1529_v14 = vld [vmem:[#allocation2 + $0x60] sm:$0xff]   ;;  %v1532_v17 = vld [vmem:[#allocation2 + $0x68] sm:$0xff]   ;;  %vm1150_vm9 = vcmask 1046528  }
  0x2b   :  { %v1528_v13 = vld [vmem:[#allocation2 + $0x98] sm:$0xff]   ;;  %v1530_v15 = vld [vmem:[#allocation2 + $0x20] sm:$0xff]   ;;  %v1533_v18 = vld [vmem:[#allocation2 + $0x28] sm:$0xff]  }
  0x2c   :  { %v1531_v16 = vld [vmem:[#allocation2 + $0xa0] sm:$0xff]   ;;  %v1534_v19 = vld [vmem:[#allocation2 + $0xa8] sm:$0xff]   ;;  %v1535_v20 = vld [vmem:[#allocation2 + $0x70] sm:$0xff]  }
  0x2d   :  { %1227 = vmatpush3.bf16.msra.mxu0 %v1521_v6  ;;  %1329 = vmatpush3.bf16.msra.mxu1 %v1522_v7  ;;  %v1536_v21 = vld [vmem:[#allocation2 + $0x30] sm:$0xff]   ;;  %v1753_v23 = vld [vmem:[%s1984_s0] sm:$0xff]  ;;  %v1758_v24 = vld [vmem:[%s1984_s0 + $0x8] sm:$0xff] }
  0x2e   :  { %1228 = vmatprep.subr.bf16.mxu0 %v1523_v8  ;;  %1330 = vmatprep.subr.bf16.mxu1 %v1645_v0  ;;  %v1537_v22 = vld [vmem:[#allocation2 + $0xb0] sm:$0xff]   ;;  %v1538_v25 = vld [vmem:[#allocation2 + $0x78] sm:$0xff]   ;;  %v75_v26 = vpack.c.bf16 %v1758_v24, %v1753_v23  ;;  %v72_v27 = vld [vmem:[%s1985_s1 + $0x8] sm:$0x3f] }
  0x2f   :  { %v1539_v28 = vld [vmem:[#allocation2 + $0x38] sm:$0xff]   ;;  %375 = vperm.xlu0 %1516, %v72_v27   ;;  %v71_v29 = vld [vmem:[%s1985_s1] sm:$0xff]  ;;  %v402_v34 = vld [vmem:[%s1994_s10 + $0x8] sm:$0xff] }
  0x30   :  { %v77_v30 = vshrl.u32 %v75_v26, 16  ;;  %v79_v31 = vshll.u32 %v75_v26, 16  ;;  %v1540_v32 = vld [vmem:[#allocation2 + $0xb8] sm:$0xff]   ;;  %v401_v33 = vld [vmem:[%s1994_s10] sm:$0xff]  ;;  %v85_v36 = vrot.slane %v75_v26, 1  ;;  %v403_v40 = vld [vmem:[%s1994_s10 + $0x10] sm:$0xff] }
  0x31   :  { %1229 = vmatpush3.bf16.msra.mxu0 %v1524_v9  ;;  %1331 = vmatpush3.bf16.msra.mxu1 %v1525_v10  ;;  %v1776_v38 = vpack.c.bf16 %v402_v34, %v401_v33  ;;  %v404_v41 = vld [vmem:[%s1994_s10 + $0x18] sm:$0xff]  ;;  %v405_v43 = vld [vmem:[%s1994_s10 + $0x20] sm:$0xff]  ;;  %v406_v44 = vld [vmem:[%s1994_s10 + $0x28] sm:$0xff] }
  0x32   :  { %1230 = vmatprep.subr.bf16.mxu0 %v1526_v11  ;;  %1332 = vmatprep.subr.bf16.mxu1 %v1645_v0  ;;  %v81_v35 = vrot.slane %v79_v31, 1  ;;  %v1792_v42 = vpack.c.bf16 %v404_v41, %v403_v40  ;;  %v1802_v45 = vpack.c.bf16 %v406_v44, %v405_v43  ;;  %v407_v46 = vld [vmem:[%s1994_s10 + $0x30] sm:$0xff]  ;;  %v408_v47 = vld [vmem:[%s1994_s10 + $0x38] sm:$0xff]  ;;  %v409_v49 = vld [vmem:[%s1994_s10 + $0x40] sm:$0xff] }
  0x33   :  { %370 = vperm.xlu0 %1516, %v71_v29   ;;  %v1812_v48 = vpack.c.bf16 %v408_v47, %v407_v46  ;;  %v410_v50 = vld [vmem:[%s1994_s10 + $0x48] sm:$0xff]  ;;  %v411_v52 = vld [vmem:[%s1994_s10 + $0x50] sm:$0xff]  ;;  %v412_v53 = vld [vmem:[%s1994_s10 + $0x58] sm:$0xff] }
  0x34   :  { %v82_v37 = vor.u32 %v81_v35, %v77_v30  ;;  %v1822_v51 = vpack.c.bf16 %v410_v50, %v409_v49  ;;  %v1832_v54 = vpack.c.bf16 %v412_v53, %v411_v52  ;;  %v413_v55 = vld [vmem:[%s1994_s10 + $0x60] sm:$0xff]  ;;  %v414_v56 = vld [vmem:[%s1994_s10 + $0x68] sm:$0xff]  ;;  %v415_v58 = vld [vmem:[%s1994_s10 + $0x70] sm:$0xff] }
  0x35   :  { %1231 = vmatpush3.bf16.msra.mxu0 %v1527_v12  ;;  %1333 = vmatpush3.bf16.msra.mxu1 %v1528_v13  ;;  %v1842_v57 = vpack.c.bf16 %v414_v56, %v413_v55  ;;  %v416_v59 = vld [vmem:[%s1994_s10 + $0x78] sm:$0xff]  ;;  %v1172_v1 = vld [vmem:[%s1987_s3] ss:$0 sm:$0xff]  ;;  %v525_v41 = vld [vmem:[%s1995_s11 + $0x8] sm:$0xff] }
  0x36   :  { %1232 = vmatprep.subr.bf16.mxu0 %v1529_v14  ;;  %1334 = vmatprep.subr.bf16.mxu1 %v1645_v0  ;;  %v1851_v60 = vpack.c.bf16 %v416_v59, %v415_v58  ;;  %v524_v40 = vld [vmem:[%s1995_s11] sm:$0xff]  ;;  %v1543_v47 = vld [vmem:[#allocation5 + $0x88] sm:$0xff]   ;;  %v1649_v59 = vmov 1966171168   ;;  %vm627_vm7 = vmand %vm399_vm2, %vm626_vm4 }
  0x37   :  { %318 = vmatprep.mubr.bf16.mxu0 %v82_v37  ;;  %v1886_v43 = vpack.c.bf16 %v525_v41, %v524_v40  ;;  %v1541_v44 = vld [vmem:[#allocation5 + $0x80] sm:$0xff]   ;;  %v1561_v40 = vld [vmem:[#allocation5 + $0xb8] sm:$0xff]   ;;  %v1562_v41 = vld [vmem:[#allocation5 + $0x30] sm:$0xff]  }
  0x38   :  { %v1542_v46 = vld [vmem:[#allocation5 + $0x40] sm:$0xff]   ;;  %vm631_vm8 = vmand %vm629_vm5, %vm630_vm6 }
  0x39   :  { %1233 = vmatpush3.bf16.msra.mxu0 %v1530_v15  ;;  %1335 = vmatpush3.bf16.msra.mxu1 %v1531_v16 }
  0x3a   :  { %1234 = vmatprep.subr.bf16.mxu0 %v1532_v17  ;;  %1336 = vmatprep.subr.bf16.mxu1 %v1645_v0 }
  0x3d   :  { %1235 = vmatpush3.bf16.msra.mxu0 %v1533_v18  ;;  %1337 = vmatpush3.bf16.msra.mxu1 %v1534_v19 }
  0x3e   :  { %1236 = vmatprep.subr.bf16.mxu0 %v1535_v20  ;;  %1338 = vmatprep.subr.bf16.mxu1 %v1645_v0 }
  0x41   :  { %1237 = vmatpush3.bf16.msra.mxu0 %v1536_v21  ;;  %1339 = vmatpush3.bf16.msra.mxu1 %v1537_v22 }
  0x42   :  { %1238 = vmatprep.subr.bf16.mxu0 %v1538_v25  ;;  %1340 = vmatprep.subr.bf16.mxu1 %v1645_v0 }
  0x45   :  { %1239 = vmatpush3.bf16.msra.mxu0 %v1539_v28  ;;  %1341 = vmatpush3.bf16.msra.mxu1 %v1540_v32 }
  0x46   :  { %1450 = vmatprep.subr.bf16.mxu0 %v1648_v39  ;;  %1474 = vmatprep.subr.bf16.mxu1 %v1648_v39 }
  0x48   :  { %319 = vmatmul.mubr.bf16.vlgmr.msra.gmra.mrb[0].mxu0 %v75_v26  ;;  %1343 = vmatmul.mubr.bf16.vlgmr.msra.gmra.mrb[0].mxu1 %v85_v36 }
  0x49   :  { %1452 = vmatpush3.bf16.msra.mxu0 %v1776_v38  ;;  %1378 = vmatprep.mubr.msk.f32.mxu0 %vm1646_vm0, %v1645_v0 }
  0x4a   :  { %1453 = vmatprep.subr.bf16.mxu0 %v1648_v39  ;;  %1385 = vmatprep.mubr.msk.f32.mxu1 %vm1646_vm0, %v1645_v0 }
  0x4b   :  { %1476 = vmatpush3.bf16.msra.mxu1 %v1886_v43 }
  0x4c   :  { %1275 = vmatprep.subr.bf16.mxu1 %v1542_v46  ;;  %v1564_v46 = vld [vmem:[#allocation5 + $0x38] sm:$0xff]  }
  0x4d   :  { %1455 = vmatpush3.bf16.msra.mxu0 %v1792_v42 }
  0x4e   :  { %1456 = vmatprep.subr.bf16.mxu0 %v1648_v39 }
  0x51   :  { %1458 = vmatpush3.bf16.msra.mxu0 %v1802_v45 }
  0x52   :  { %1459 = vmatprep.subr.bf16.mxu0 %v1648_v39 }
  0x55   :  { %1461 = vmatpush3.bf16.msra.mxu0 %v1812_v48 }
  0x56   :  { %1462 = vmatprep.subr.bf16.mxu0 %v1648_v39 }
  0x59   :  { %1464 = vmatpush3.bf16.msra.mxu0 %v1822_v51 }
  0x5a   :  { %1465 = vmatprep.subr.bf16.mxu0 %v1648_v39 }
  0x5d   :  { %1467 = vmatpush3.bf16.msra.mxu0 %v1832_v54 }
  0x5e   :  { %1468 = vmatprep.subr.bf16.mxu0 %v1648_v39 }
  0x61   :  { %1470 = vmatpush3.bf16.msra.mxu0 %v1842_v57 }
  0x62   :  { %1471 = vmatprep.subr.bf16.mxu0 %v1648_v39 }
  0x65   :  { %1473 = vmatpush3.bf16.msra.mxu0 %v1851_v60 }
  0x66   :  { %1388 = vmatprep.subr.bf16.mxu0 %v1645_v0 }
  0xae   :  { %v1856_v62 = vpop.permute.xlu0 %375 }
  0xb2   :  { %v1861_v13 = vpop.permute.xlu0 %370 }
 0x11b   :  { %v1240_v61 = vpop.f32.mrb[0].mxu0  ;;  %v361_v2 = vpop.f32.mrb[0].mxu1 }
 0x11c   :  { %v1241_v63 = vpop.f32.mrb[1].mxu0  ;;  %v1344_v5 = vpop.f32.mrb[1].mxu1 }
 0x11d   :  { %v1242_v3 = vadd.f32 %v1241_v63, %v1240_v61  ;;  %v1243_v4 = vpop.f32.mrb[2].mxu0  ;;  %v364_v7 = vpop.f32.mrb[2].mxu1  ;;  %v498_v61 = vunpack.c.l.s4 %v1649_v59  ;;  %v500_v63 = vlaneseq }
 0x11e   :  { %v1244_v6 = vpop.f32.mrb[3].mxu0  ;;  %v1345_v10 = vpop.f32.mrb[3].mxu1 }
 0x11f   :  { %v321_v8 = vadd.f32 %v1242_v3, %v1172_v1  ;;  %v1245_v9 = vadd.f32 %v1244_v6, %v1243_v4  ;;  %v514_v10 = vld [vmem:[%s1989_s5] sm:$0x1] }
 0x121   :  { %v362_v11 = vadd.f32 %v361_v2, %v321_v8  ;;  %v324_v12 = vadd.f32 %v1245_v9, %v1172_v1  ;;  %v499_v1 = vunpack.c.0.s8 %v498_v61  ;;  %v1891_v2 = vshrl.u32 %v500_v63, 7 }
 0x123   :  { %v365_v14 = vadd.f32 %v364_v7, %v324_v12  ;;  %v1864_v15 = vmul.f32 %v1861_v13, %v362_v11  ;;  %v1894_v3 = vsub.s32 %v499_v1, %v1891_v2  ;;  %v493_v7 = vld [vmem:[%s1988_s4] sm:$0x1]  ;;  %v1905_v12 = vsub.s32 0, %v1891_v2 }
 0x125   :  { %v1867_v16 = vmul.f32 %v1856_v62, %v365_v14  ;;  %v389_v20 = vmul.f32 %v1864_v15, %v1864_v15 }
 0x127   :  { %v381_v17 = vsel %vm380_vm1, %v1867_v16, 0.0  ;;  %v390_v18 = vmul.f32 %v1867_v16, %v1867_v16 }
 0x128   :  { %v382_v19 = vadd.f32 %v381_v17, %v1864_v15 }
 0x129   :  { %v391_v21 = vsel %vm380_vm1, %v390_v18, 0.0  ;;  %v1544_v18 = vld [vmem:[#allocation5] sm:$0xff]  }
 0x12a   :  { %v383_v22 = vrot.slane %v382_v19, 4  ;;  %v392_v25 = vadd.f32 %v391_v21, %v389_v20  ;;  %v1545_v20 = vld [vmem:[#allocation5 + $0x48] sm:$0xff]   ;;  %v1546_v21 = vld [vmem:[#allocation5 + $0x90] sm:$0xff]  }
 0x12c   :  { %v384_v26 = vadd.f32 %v383_v22, %v382_v19  ;;  %v393_v27 = vrot.slane %v392_v25, 4  ;;  %v1547_v22 = vld [vmem:[#allocation5 + $0x8] sm:$0xff]  }
 0x12e   :  { %v385_v28 = vrot.slane %v384_v26, 2  ;;  %v394_v29 = vadd.f32 %v393_v27, %v392_v25  ;;  %v1548_v25 = vld [vmem:[#allocation5 + $0x50] sm:$0xff]  }
 0x12f   :  { %v1550_v27 = vld [vmem:[#allocation5 + $0x10] sm:$0xff]  }
 0x130   :  { %v386_v30 = vadd.f32 %v385_v28, %v384_v26  ;;  %v395_v31 = vrot.slane %v394_v29, 2  ;;  %v1549_v26 = vld [vmem:[#allocation5 + $0x98] sm:$0xff]  }
 0x131   :  { %v1551_v28 = vld [vmem:[#allocation5 + $0x58] sm:$0xff]  }
 0x132   :  { %v387_v32 = vrot.slane %v386_v30, 1  ;;  %v396_v33 = vadd.f32 %v395_v31, %v394_v29  ;;  %v1552_v29 = vld [vmem:[#allocation5 + $0xa0] sm:$0xff]  }
 0x133   :  { %v1554_v31 = vld [vmem:[#allocation5 + $0x60] sm:$0xff]  }
 0x134   :  { %v397_v34 = vrot.slane %v396_v33, 1  ;;  %v388_v35 = vadd.f32 %v387_v32, %v386_v30  ;;  %v1553_v30 = vld [vmem:[#allocation5 + $0x18] sm:$0xff]   ;;  %v1555_v32 = vld [vmem:[#allocation5 + $0xa8] sm:$0xff]  }
 0x136   :  { %v398_v36 = vadd.f32 %v397_v34, %v396_v33  ;;  %v1556_v33 = vld [vmem:[#allocation5 + $0x20] sm:$0xff]   ;;  %v1557_v34 = vld [vmem:[#allocation5 + $0x68] sm:$0xff]  }
 0x138   :  { %v400_v37 = vsel %vm399_vm2, %v388_v35, %v398_v36  ;;  %v1558_v35 = vld [vmem:[#allocation5 + $0xb0] sm:$0xff]   ;;  %v1559_v36 = vld [vmem:[#allocation5 + $0x28] sm:$0xff]  }
 0x139   :  { %1379 = vmatmul.mubr.f32.vlgmr.msra.gmra.mrb[4].mxu0 %v400_v37  ;;  %v1560_v37 = vld [vmem:[#allocation5 + $0x70] sm:$0xff]  }
 0x13a   :  { %1404 = vmatprep.mubr.msk.bf16.mxu0 %vm1646_vm0, %v1645_v0  ;;  %1389 = vmatpush3.bf16.msra.mxu0 %v1541_v44  ;;  %v1563_v44 = vld [vmem:[#allocation5 + $0x78] sm:$0xff]  }
 0x13b   :  { %1390 = vmatprep.subr.bf16.mxu0 %v1645_v0 }
 0x13e   :  { %1391 = vmatpush3.bf16.msra.mxu0 %v1543_v47  ;;  %v608_v47 = vsub.s32 1, %v1891_v2 }
 0x13f   :  { %1392 = vmatprep.subr.bf16.mxu0 %v1645_v0 }
 0x142   :  { %1393 = vmatpush3.bf16.msra.mxu0 %v1546_v21 }
 0x143   :  { %1394 = vmatprep.subr.bf16.mxu0 %v1645_v0 }
 0x146   :  { %1395 = vmatpush3.bf16.msra.mxu0 %v1549_v26 }
 0x147   :  { %1396 = vmatprep.subr.bf16.mxu0 %v1645_v0 }
 0x14a   :  { %1397 = vmatpush3.bf16.msra.mxu0 %v1552_v29 }
 0x14b   :  { %1398 = vmatprep.subr.bf16.mxu0 %v1645_v0 }
 0x14e   :  { %1399 = vmatpush3.bf16.msra.mxu0 %v1555_v32 }
 0x14f   :  { %1400 = vmatprep.subr.bf16.mxu0 %v1645_v0 }
 0x152   :  { %1401 = vmatpush3.bf16.msra.mxu0 %v1558_v35 }
 0x153   :  { %1402 = vmatprep.subr.bf16.mxu0 %v1645_v0 }
 0x156   :  { %1403 = vmatpush3.bf16.msra.mxu0 %v1561_v40 }
 0x157   :  { %1501 = vmatprep.subr.bf16.mxu0 %v1648_v39 }
 0x20c   :  { %v483_v49 = vpop.f32.mrb[4].mxu0 }
 0x20d   :  { %v487_v50 = vmul.f32 0.011904762, %v483_v49  ;;  %v1380_v52 = vpop.f32.mrb[5].mxu0 }
 0x20f   :  { %v488_v53 = vmul.f32 %v487_v50, %v487_v50 }
 0x211   :  { %v490_v55 = vrot.slane %v488_v53, 7 }
 0x213   :  { %v492_v56 = vsub.f32 %v487_v50, %v490_v55 }
 0x215   :  { %v494_v58 = vadd.f32 1e-05, %v492_v56 }
 0x217   :  { %1565 = vrsqrt.f32 %v494_v58 }
 0x221   :  { %v1566_v4 = vpop.eup %1565 }
 0x222   :  { %v503_v5 = vrot.slane %v1566_v4, %v1894_v3 }
 0x224   :  { %v504_v6 = vcombine.high %v503_v5, %v503_v5 }
 0x226   :  { %v511_v8 = vrot.slane %v504_v6, %v1894_v3 }
 0x228   :  { %v513_v9 = vmul.f32 %v511_v8, %v493_v7 }
 0x22a   :  { %v515_v11 = vmul.f32 %v513_v9, %v487_v50 }
 0x22c   :  { %v516_v14 = vsub.f32 %v514_v10, %v515_v11 }
 0x22e   :  { %v521_v17 = vrot.slane %v516_v14, %v1905_v12 }
 0x230   :  { %v523_v19 = vsel %vm399_vm2, %v513_v9, %v521_v17 }
 0x231   :  { %1386 = vmatmul.mubr.msk.f32.vlgmr.msra.gmra.mrb[4].mxu1 %vm526_vm3, %v523_v19 }
 0x232   :  { %1276 = vmatpush3.bf16.msra.mxu1 %v1544_v18 }
 0x233   :  { %1277 = vmatprep.subr.bf16.mxu1 %v1545_v20 }
 0x236   :  { %1278 = vmatpush3.bf16.msra.mxu1 %v1547_v22 }
 0x237   :  { %1279 = vmatprep.subr.bf16.mxu1 %v1548_v25 }
 0x23a   :  { %1280 = vmatpush3.bf16.msra.mxu1 %v1550_v27 }
 0x23b   :  { %1281 = vmatprep.subr.bf16.mxu1 %v1551_v28 }
 0x23e   :  { %1282 = vmatpush3.bf16.msra.mxu1 %v1553_v30 }
 0x23f   :  { %1283 = vmatprep.subr.bf16.mxu1 %v1554_v31 }
 0x242   :  { %1284 = vmatpush3.bf16.msra.mxu1 %v1556_v33 }
 0x243   :  { %1285 = vmatprep.subr.bf16.mxu1 %v1557_v34 }
 0x246   :  { %1286 = vmatpush3.bf16.msra.mxu1 %v1559_v36 }
 0x247   :  { %1287 = vmatprep.subr.bf16.mxu1 %v1560_v37 }
 0x24a   :  { %1288 = vmatpush3.bf16.msra.mxu1 %v1562_v41 }
 0x24b   :  { %1289 = vmatprep.subr.bf16.mxu1 %v1563_v44 }
 0x24e   :  { %1290 = vmatpush3.bf16.msra.mxu1 %v1564_v46 }
 0x24f   :  { %1477 = vmatprep.subr.bf16.mxu1 %v1648_v39 }
 0x304   :  { %v596_v49 = vpop.f32.mrb[4].mxu1 }
 0x305   :  { %v603_v50 = vrot.slane %v596_v49, %v1905_v12  ;;  %v1387_v52 = vpop.f32.mrb[5].mxu1  ;;  %v609_v56 = vrot.slane %v596_v49, %v608_v47 }
 0x307   :  { %v604_v53 = vmul.f32 %v603_v50, %v1864_v15  ;;  %v605_v55 = vmul.f32 %v603_v50, %v1867_v16 }
 0x309   :  { %v610_v58 = vadd.f32 %v609_v56, %v604_v53  ;;  %v611_v59 = vadd.f32 %v609_v56, %v605_v55 }
 0x30b   :  { %v612_v61 = vmax.f32 %v610_v58, 0.0  ;;  %v613_v63 = vmax.f32 %v611_v59, 0.0 }
 0x30d   :  { %v614_v1 = vmul.f32 %v612_v61, %v1861_v13  ;;  %v615_v4 = vmul.f32 %v613_v63, %v1856_v62 }
 0x30f   :  { %v616_v5 = vpack.c.bf16 %v615_v4, %v614_v1 }
 0x311   :  { %v618_v6 = vshrl.u32 %v616_v5, 16  ;;  %v621_v15 = vshll.u32 %v616_v5, 16  ;;  %v1022_v5 = vld [vmem:[%s1992_s8] sm:$0x1]  ;;  %s1650_s8 = smov [#allocation7]  }
 0x313   :  { %v620_v7 = vrot.slane %v618_v6, 7 }
 0x315   :  { %v623_v16 = vor.u32 %v621_v15, %v620_v7  ;;  %v1043_v15 = vld [vmem:[%s1993_s9] sm:$0x1]  ;;  %s1159_s9 = sshll.u32 %s1650_s8, 4  ;;  %s1160_s9 = int_to_ptr.vmem [resolvable:$true] %s1159_s9 }
 0x316   :  { %s1613_s15 = scalar_lea.vmem %s1160_s9, 256  ;;  %p1618_p3 = scmp.lt.s32.totalorder %s1160_s9, %s1160_s9 }
 0x317   :  { %v628_v8 = vsel %vm627_vm7, 0, %v623_v16  ;;  %p1614_p2 = scmp.ne.s32.totalorder %s1160_s9, %s1613_s15  ;;  %p1619_p4 = scmp.lt.s32.totalorder %s1613_s15, %s1613_s15 }
 0x318   :  { %v632_v9 = vsel %vm631_vm8, %v628_v8, 0 }
 0x319   :  { %v642_v10 = vrot.slane %v632_v9, 1  ;;  %v636_v11 = vshll.u32 %v632_v9, 16  ;;  %v634_v14 = vshrl.u32 %v632_v9, 16  ;;  %p1620_p5 = por %p1619_p4, %p1618_p3 }
 0x31b   :  { %1405 = vmatmul.mubr.bf16.vlgmr.msra.gmra.mrb[8].mxu0 %v642_v10  ;;  %v638_v17 = vrot.slane %v636_v11, 1  ;;  %p1621_p6 = pnand %p1620_p5, %p1614_p2 }
 0x31c   :  { %1503 = vmatpush3.bf16.msra.mxu0 %v1886_v43  ;;  %1447 = vmatprep.mubr.msk.f32.mxu0 %vm1646_vm0, %v1645_v0 }
 0x31d   :  { %v639_v18 = vor.u32 %v638_v17, %v634_v14 }
 0x31f   :  { %875 = vmatprep.mubr.bf16.mxu1 %v639_v18 }
 0x320   :  { %876 = vmatmul.mubr.bf16.vlgmr.msra.gmra.mrb[8].mxu1 %v632_v9 }
 0x321   :  { %1479 = vmatpush3.bf16.msra.mxu1 %v1776_v38  ;;  %1440 = vmatprep.mubr.msk.f32.mxu1 %vm1646_vm0, %v1645_v0 }
 0x322   :  { %1480 = vmatprep.subr.bf16.mxu1 %v1648_v39 }
 0x325   :  { %1482 = vmatpush3.bf16.msra.mxu1 %v1792_v42 }
 0x326   :  { %1483 = vmatprep.subr.bf16.mxu1 %v1648_v39 }
 0x329   :  { %1485 = vmatpush3.bf16.msra.mxu1 %v1802_v45 }
 0x32a   :  { %1486 = vmatprep.subr.bf16.mxu1 %v1648_v39 }
 0x32d   :  { %1488 = vmatpush3.bf16.msra.mxu1 %v1812_v48 }
 0x32e   :  { %1489 = vmatprep.subr.bf16.mxu1 %v1648_v39 }
 0x331   :  { %1491 = vmatpush3.bf16.msra.mxu1 %v1822_v51  ;;  %v1198_v51 = vld [vmem:[%s1991_s7] ss:$0 sm:$0xff] }
 0x332   :  { %1492 = vmatprep.subr.bf16.mxu1 %v1648_v39 }
 0x335   :  { %1494 = vmatpush3.bf16.msra.mxu1 %v1832_v54 }
 0x336   :  { %1495 = vmatprep.subr.bf16.mxu1 %v1648_v39 }
 0x339   :  { %1497 = vmatpush3.bf16.msra.mxu1 %v1842_v57 }
 0x33a   :  { %1498 = vmatprep.subr.bf16.mxu1 %v1648_v39 }
 0x33d   :  { %1500 = vmatpush3.bf16.msra.mxu1 %v1851_v60 }
 0x3ee   :  { %v918_v0 = vpop.f32.mrb[8].mxu0 }
 0x3ef   :  { %v1406_v38 = vpop.f32.mrb[9].mxu0 }
 0x3f0   :  { %v921_v42 = vpop.f32.mrb[10].mxu0 }
 0x3f1   :  { %v1407_v45 = vpop.f32.mrb[11].mxu0 }
 0x3f3   :  { %v1291_v48 = vpop.f32.mrb[8].mxu1 }
 0x3f4   :  { %v1292_v43 = vpop.f32.mrb[9].mxu1 }
 0x3f5   :  { %v1293_v19 = vadd.f32 %v1292_v43, %v1291_v48  ;;  %v1294_v54 = vpop.f32.mrb[10].mxu1 }
 0x3f6   :  { %v1295_v20 = vpop.f32.mrb[11].mxu1 }
 0x3f7   :  { %v878_v21 = vadd.f32 %v1293_v19, %v1198_v51  ;;  %v1296_v22 = vadd.f32 %v1295_v20, %v1294_v54 }
 0x3f9   :  { %v919_v57 = vadd.f32 %v918_v0, %v878_v21  ;;  %v881_v25 = vadd.f32 %v1296_v22, %v1198_v51 }
 0x3fb   :  { %v922_v39 = vadd.f32 %v921_v42, %v881_v25  ;;  %v925_v60 = vmul.f32 %v919_v57, %v1861_v13 }
 0x3fd   :  { %v926_v26 = vmul.f32 %v922_v39, %v1856_v62  ;;  %v935_v29 = vmul.f32 %v925_v60, %v925_v60 }
 0x3ff   :  { %v927_v27 = vsel %vm380_vm1, %v926_v26, 0.0  ;;  %v936_v28 = vmul.f32 %v926_v26, %v926_v26 }
 0x400   :  { %v928_v30 = vadd.f32 %v927_v27, %v925_v60 }
 0x401   :  { %v937_v31 = vsel %vm380_vm1, %v936_v28, 0.0 }
 0x402   :  { %v929_v32 = vrot.slane %v928_v30, 4  ;;  %v938_v33 = vadd.f32 %v937_v31, %v935_v29 }
 0x404   :  { %v930_v34 = vadd.f32 %v929_v32, %v928_v30  ;;  %v939_v35 = vrot.slane %v938_v33, 4 }
 0x406   :  { %v931_v36 = vrot.slane %v930_v34, 2  ;;  %v940_v37 = vadd.f32 %v939_v35, %v938_v33 }
 0x408   :  { %v932_v40 = vadd.f32 %v931_v36, %v930_v34  ;;  %v941_v41 = vrot.slane %v940_v37, 2 }
 0x40a   :  { %v933_v44 = vrot.slane %v932_v40, 1  ;;  %v942_v46 = vadd.f32 %v941_v41, %v940_v37 }
 0x40c   :  { %v943_v13 = vrot.slane %v942_v46, 1  ;;  %v934_v49 = vadd.f32 %v933_v44, %v932_v40 }
 0x40e   :  { %v944_v62 = vadd.f32 %v943_v13, %v942_v46 }
 0x410   :  { %v945_v50 = vsel %vm399_vm2, %v934_v49, %v944_v62 }
 0x411   :  { %1441 = vmatmul.mubr.f32.vlgmr.msra.gmra.mrb[6].mxu1 %v945_v50 }
 0x4e4   :  { %v1012_v52 = vpop.f32.mrb[6].mxu1 }
 0x4e5   :  { %v1016_v53 = vmul.f32 0.011904762, %v1012_v52  ;;  %v1442_v55 = vpop.f32.mrb[7].mxu1 }
 0x4e7   :  { %v1017_v56 = vmul.f32 %v1016_v53, %v1016_v53 }
 0x4e9   :  { %v1019_v58 = vrot.slane %v1017_v56, 7 }
 0x4eb   :  { %v1021_v59 = vsub.f32 %v1016_v53, %v1019_v58 }
 0x4ed   :  { %v1023_v61 = vadd.f32 1e-05, %v1021_v59 }
 0x4ef   :  { %1567 = vrsqrt.f32 %v1023_v61 }
 0x4f9   :  { %v1568_v63 = vpop.eup %1567 }
 0x4fa   :  { %v1032_v1 = vrot.slane %v1568_v63, %v1894_v3 }
 0x4fc   :  { %v1033_v4 = vcombine.high %v1032_v1, %v1032_v1 }
 0x4fe   :  { %v1040_v6 = vrot.slane %v1033_v4, %v1894_v3 }
 0x500   :  { %v1042_v7 = vmul.f32 %v1040_v6, %v1022_v5 }
 0x502   :  { %v1044_v16 = vmul.f32 %v1042_v7, %v1016_v53 }
 0x504   :  { %v1045_v8 = vsub.f32 %v1043_v15, %v1044_v16 }
 0x506   :  { %v1050_v9 = vrot.slane %v1045_v8, %v1905_v12 }
 0x508   :  { %v1052_v10 = vsel %vm399_vm2, %v1042_v7, %v1050_v9 }
 0x509   :  { %1448 = vmatmul.mubr.msk.f32.vlgmr.msra.gmra.mrb[6].mxu0 %vm526_vm3, %v1052_v10 }
 0x5dc   :  { %v1122_v11 = vpop.f32.mrb[6].mxu0 }
 0x5dd   :  { %v1129_v14 = vrot.slane %v1122_v11, %v1905_v12  ;;  %v1449_v17 = vpop.f32.mrb[7].mxu0  ;;  %v1135_v3 = vrot.slane %v1122_v11, %v608_v47 }
 0x5df   :  { %v1130_v18 = vmul.f32 %v1129_v14, %v925_v60  ;;  %v1131_v0 = vmul.f32 %v1129_v14, %v926_v26 }
 0x5e1   :  { %v1136_v38 = vadd.f32 %v1135_v3, %v1130_v18  ;;  %v1137_v42 = vadd.f32 %v1135_v3, %v1131_v0 }
 0x5e3   :  { %v1140_v45 = vrot.slane %v1136_v38, 7  ;;  %v1141_v48 = vrot.slane %v1137_v42, 7 }
 0x5e5   :  { %v1142_v51 = vsel %vm399_vm2, %v1140_v45, %v1141_v48  ;;  %v1145_v43 = vadd.f32 %v1140_v45, %v1753_v23 }
 0x5e6   :  { %v1146_v19 = vadd.f32 %v1142_v51, %v1758_v24 }
 0x5e7   :  { %v1147_v54 = vmax.f32 %v1145_v43, 0.0 }
 0x5e8   :  { %v1148_v12 = vmax.f32 %v1146_v19, 0.0 }
 0x5e9   :  { %v1149_v20 = vsel %vm399_vm2, 0.0, %v1147_v54 }
 0x5ea   :  { %1152 = vst [vmem:[#allocation7] sm:$0xff] %v1149_v20  ;;  %v1151_v2 = vsel %vm1150_vm9, %v1148_v12, 0.0 }
 0x5eb   :  { %1153 = vst [vmem:[#allocation7 + $0x8] sm:$0xff] %v1151_v2 }
 0x5ec   :  { %1624 = shalt.err (!%p1621_p6)
}
 0x5ed   :  { %s1625_s17 = scalar_lea.hbm %s1996_s12, 256 }
 0x5ee   :  { %p1626_p7 = scmp.ne.s32.totalorder %s1996_s12, %s1625_s17  ;;  %p1629_p8 = scmp.lt.u32.totalorder %s1625_s17, %s1996_s12 }
 0x5f0   :  { %p1631_p9 = pnand %p1629_p8, %p1626_p7 }
 0x5f2   :  { %1634 = shalt.err (!%p1631_p9)
}
 0x5f3   :  { %s1651_s21 = smov 128   ;;  %s1652_s23 = smov 8  }
 0x5f4   :  { %1165 = dma.vmem_to_hbm [thread:$0]  %s1160_s9, 256, %s1996_s12, [#allocation4], %s1651_s21, %s1651_s21, %s1652_s23  }
 0x5f5   :  { %1639 = dma.done.wait [#allocation4], 256  }
 0x5f6   :  { %1640 = vsyncadd [#allocation4], 4294967040 }
 0x5f7   :  { %1169 = vsyncpa [#allocation3], 1 }
 0x5f8   :  { %1170 = vsyncpa [#allocation6], 1 }
 0x5f9   :  { %1171 = vsyncpa [#allocation4], 1 }

</bundles_post_ra>
